<compile_context>
chip_gen: v6e
topology: v6e:2x2x1
jax: 0.10.0
libtpu: 0.0.40
codegen_flags: <defaults>
</compile_context>

<pallas_src>
import functools

import jax
import jax.numpy as jnp
from jax import lax
from jax.experimental import pallas as pl
from jax.experimental.pallas import tpu as pltpu


def _fused_tcn_kernel(*refs, layer_cfgs, kernel_size, seq_len, flat_len):
    """All TemporalBlocks in a single kernel invocation.

    refs = (x_ref, <per-layer param refs...>, out_ref)
    x_ref: (C_in, B*L).  Per layer: w1f (C_out, K*C_in), b1 (C_out, 1),
    w2f (C_out, K*C_out), b2 (C_out, 1) and, iff has_downsample,
    wd (C_out, C_in), bd (C_out, 1).  out_ref: (C_last, B*L).
    """
    K = kernel_size
    L = seq_len
    BL = flat_len
    x_ref = refs[0]
    out_ref = refs[-1]
    params = refs[1:-1]

    def causal_dilated_conv(act, w_flat, b, dilation):
        # act: (C, BL) value.  Builds the K causally-shifted dilated taps as
        # values, stacks them into an im2col slab and does ONE MXU matmul.
        c = act.shape[0]
        taps = []
        for k in range(K):
            s = (K - 1 - k) * dilation          # causal right-shift of tap k
            if s == 0:
                taps.append(act)
            else:
                # shift right by s along the lane (time) axis, zero-filling.
                shifted = jnp.concatenate(
                    [jnp.zeros((c, s), jnp.float32), act[:, :BL - s]], axis=1)
                # batch is merged into the lane axis: additionally zero any
                # position whose source would come from the previous batch
                # element (time-within-sequence < s).
                t_in_seq = lax.broadcasted_iota(jnp.int32, (c, BL), 1) % L
                taps.append(jnp.where(t_in_seq >= s, shifted, 0.0))
        im2col = jnp.concatenate(taps, axis=0)                     # (K*C, BL)
        # bias folded straight onto the accumulator (no zeros+adds pass).
        return jnp.dot(w_flat, im2col,
                       preferred_element_type=jnp.float32) + b

    act = x_ref[...]                                               # (C_in, BL)
    idx = 0
    for dilation, has_downsample in layer_cfgs:
        w1 = params[idx][...]
        b1 = params[idx + 1][...]
        w2 = params[idx + 2][...]
        b2 = params[idx + 3][...]
        idx += 4
        h = jnp.maximum(causal_dilated_conv(act, w1, b1, dilation), 0.0)
        # nn.Dropout is identity in eval mode (mode == 'val'); omitted.
        o = jnp.maximum(causal_dilated_conv(h, w2, b2, dilation), 0.0)
        if has_downsample:                      # 1x1 Conv1d residual projection
            wd = params[idx][...]
            bd = params[idx + 1][...]
            idx += 2
            res = jnp.dot(wd, act, preferred_element_type=jnp.float32) + bd
        else:
            res = act
        act = jnp.maximum(o + res, 0.0)
    out_ref[...] = act


@functools.partial(jax.jit, static_argnames=("kernel_size",))
def temporal_conv_net(x, params, kernel_size=3):
    """Fused TemporalConvNet forward.  x: (B, C_in, L) f32 -> (B, C_last, L)."""
    B, c_in, L = x.shape
    BL = B * L

    # Lane-dense layout plumbing (wrapper side, fused under jit):
    # (B, C, L) -> (C, B*L)
    x_flat = jnp.transpose(x, (1, 0, 2)).reshape(c_in, BL)

    inputs = [x_flat]
    layer_cfgs = []
    for i, p in enumerate(params):
        dilation = 2 ** i                       # matches TemporalConvNet spec
        c_out = p['w1'].shape[1]
        c_in_l = p['w1'].shape[2]
        # (K, C_out, C_in) -> (C_out, K*C_in) so each conv is ONE matmul whose
        # column blocks line up with the im2col tap blocks.
        w1f = jnp.transpose(p['w1'], (1, 0, 2)).reshape(c_out, kernel_size * c_in_l)
        w2f = jnp.transpose(p['w2'], (1, 0, 2)).reshape(c_out, kernel_size * c_out)
        inputs += [w1f, p['b1'], w2f, p['b2']]
        has_ds = 'wd' in p
        if has_ds:
            inputs += [p['wd'][0], p['bd']]     # (C_out, C_in), (C_out, 1)
        layer_cfgs.append((dilation, has_ds))
    c_last = params[-1]['w1'].shape[1]

    kernel = functools.partial(
        _fused_tcn_kernel,
        layer_cfgs=tuple(layer_cfgs),
        kernel_size=kernel_size, seq_len=L, flat_len=BL)

    vmem = pl.BlockSpec(memory_space=pltpu.MemorySpace.VMEM)
    out_flat = pl.pallas_call(
        kernel,
        out_shape=jax.ShapeDtypeStruct((c_last, BL), jnp.float32),
        in_specs=[vmem] * len(inputs),
        out_specs=vmem,
    )(*inputs)

    # (C_last, B*L) -> (B, C_last, L)
    return jnp.transpose(out_flat.reshape(c_last, B, L), (1, 0, 2))


def init_tcn_params(key, num_inputs, num_channels, kernel_size=3):
    """Synthetic init matching TemporalBlock.init_weights().

    weight_norm(v) with g initialized to ||v|| gives effective weight == v,
    so conv weights are drawn directly from N(0, 0.01^2).  Layer i uses
    dilation 2**i (as in TemporalConvNet); params hold array leaves only.
    """
    params = []
    for i, c_out in enumerate(num_channels):
        c_in = num_inputs if i == 0 else num_channels[i - 1]
        key, k1, k2, k3, k4, k5, k6 = jax.random.split(key, 7)
        bound1 = (c_in * kernel_size) ** -0.5
        bound2 = (c_out * kernel_size) ** -0.5
        p = dict(
            # stored as (K, C_out, C_in); flattened per-conv in the wrapper
            w1=0.01 * jax.random.normal(k1, (kernel_size, c_out, c_in), jnp.float32),
            b1=jax.random.uniform(k3, (c_out, 1), jnp.float32, -bound1, bound1),
            w2=0.01 * jax.random.normal(k2, (kernel_size, c_out, c_out), jnp.float32),
            b2=jax.random.uniform(k4, (c_out, 1), jnp.float32, -bound2, bound2),
        )
        if c_in != c_out:
            bd_bound = c_in ** -0.5
            p['wd'] = 0.01 * jax.random.normal(k5, (1, c_out, c_in), jnp.float32)
            p['bd'] = jax.random.uniform(k6, (c_out, 1), jnp.float32, -bd_bound, bd_bound)
        params.append(p)
    return params


# ---------- pure-JAX reference (correctness check) ----------
def _block_reference(x, p, dilation, kernel_size):
    pad = (kernel_size - 1) * dilation
    L = x.shape[-1]

    def causal_conv(inp, w, b):
        xp = jnp.pad(inp, ((0, 0), (0, 0), (pad, 0)))
        acc = b[None, :, :]
        for k in range(kernel_size):
            acc = acc + jnp.einsum('oi,bil->bol', w[k],
                                   xp[:, :, k * dilation:k * dilation + L])
        return acc

    h = jax.nn.relu(causal_conv(x, p['w1'], p['b1']))
    o = jax.nn.relu(causal_conv(h, p['w2'], p['b2']))
    if 'wd' in p:
        res = jnp.einsum('oi,bil->bol', p['wd'][0], x) + p['bd'][None, :, :]
    else:
        res = x
    return jax.nn.relu(o + res)


def tcn_reference(x, params, kernel_size=3):
    for i, p in enumerate(params):
        x = _block_reference(x, p, 2 ** i, kernel_size)
    return x


if __name__ == "__main__":
    key = jax.random.PRNGKey(0)
    B, C_txt, L = 2, 16, 16          # txt_feat: (batch, txt_feat_channels, seq)
    in_seq_len, tcn_levels = 8, 3    # num_channels = [in_seq_len] * tcn_levels

    k_feat, k_params = jax.random.split(key)
    # TODO(synk): TxtNet (external GPT-based text encoder) is not provided;
    # use a synthetic deterministic txt_feat as the TCN input.
    txt_feat = jax.random.normal(k_feat, (B, C_txt, L), jnp.float32)

    params = init_tcn_params(k_params, C_txt, [in_seq_len] * tcn_levels,
                             kernel_size=3)

    out = temporal_conv_net(txt_feat, params, kernel_size=3)
    out = jax.block_until_ready(out)

    ref = tcn_reference(txt_feat, params, kernel_size=3)
    assert out.shape == (B, in_seq_len, L), out.shape
    assert jnp.allclose(out, ref, atol=1e-5, rtol=1e-5), float(
        jnp.max(jnp.abs(out - ref)))

    print("KERNEL_OK")
</pallas_src>

<mosaic_0001>
module attributes {stable_mosaic.version = 11 : i64} {
  func.func @_fused_tcn_kernel(%arg0: memref<16x32xf32, #tpu.memory_space<vmem>>, %arg1: memref<8x48xf32, #tpu.memory_space<vmem>>, %arg2: memref<8x1xf32, #tpu.memory_space<vmem>>, %arg3: memref<8x24xf32, #tpu.memory_space<vmem>>, %arg4: memref<8x1xf32, #tpu.memory_space<vmem>>, %arg5: memref<8x16xf32, #tpu.memory_space<vmem>>, %arg6: memref<8x1xf32, #tpu.memory_space<vmem>>, %arg7: memref<8x24xf32, #tpu.memory_space<vmem>>, %arg8: memref<8x1xf32, #tpu.memory_space<vmem>>, %arg9: memref<8x24xf32, #tpu.memory_space<vmem>>, %arg10: memref<8x1xf32, #tpu.memory_space<vmem>>, %arg11: memref<8x24xf32, #tpu.memory_space<vmem>>, %arg12: memref<8x1xf32, #tpu.memory_space<vmem>>, %arg13: memref<8x24xf32, #tpu.memory_space<vmem>>, %arg14: memref<8x1xf32, #tpu.memory_space<vmem>>, %arg15: memref<8x32xf32, #tpu.memory_space<vmem>>) attributes {dimension_semantics = [], scalar_prefetch = 0 : i64, scratch_operands = 0 : i64, tpu.core_type = #tpu.core_type<tc>} {
    %c0 = arith.constant 0 : index
    %c0_0 = arith.constant 0 : index
    %0 = vector.load %arg0[%c0, %c0_0] : memref<16x32xf32, #tpu.memory_space<vmem>>, vector<16x32xf32>
    %c0_1 = arith.constant 0 : index
    %c0_2 = arith.constant 0 : index
    %1 = vector.load %arg1[%c0_1, %c0_2] : memref<8x48xf32, #tpu.memory_space<vmem>>, vector<8x48xf32>
    %c0_3 = arith.constant 0 : index
    %c0_4 = arith.constant 0 : index
    %2 = vector.load %arg2[%c0_3, %c0_4] : memref<8x1xf32, #tpu.memory_space<vmem>>, vector<8x1xf32>
    %c0_5 = arith.constant 0 : index
    %c0_6 = arith.constant 0 : index
    %3 = vector.load %arg3[%c0_5, %c0_6] : memref<8x24xf32, #tpu.memory_space<vmem>>, vector<8x24xf32>
    %c0_7 = arith.constant 0 : index
    %c0_8 = arith.constant 0 : index
    %4 = vector.load %arg4[%c0_7, %c0_8] : memref<8x1xf32, #tpu.memory_space<vmem>>, vector<8x1xf32>
    %cst = arith.constant 0.000000e+00 : f32
    %5 = vector.broadcast %cst : f32 to vector<16x2xf32>
    %6 = vector.extract_strided_slice %0 {offsets = [0, 0], sizes = [16, 30], strides = [1, 1]} : vector<16x32xf32> to vector<16x30xf32>
    %7 = tpu.concatenate %5, %6 in 1 : vector<16x2xf32>, vector<16x30xf32> -> vector<16x32xf32>
    %8 = tpu.iota {dimensions = array<i32: 1>} : vector<16x32xi32>
    %c16_i32 = arith.constant 16 : i32
    %c0_i32 = arith.constant 0 : i32
    %9 = arith.cmpi eq, %c16_i32, %c0_i32 : i32
    %c1_i32 = arith.constant 1 : i32
    %10 = arith.select %9, %c1_i32, %c16_i32 : i32
    %11 = vector.broadcast %10 : i32 to vector<16x32xi32>
    %12 = arith.remsi %8, %11 : vector<16x32xi32>
    %c0_i32_9 = arith.constant 0 : i32
    %13 = vector.broadcast %c0_i32_9 : i32 to vector<16x32xi32>
    %14 = arith.cmpi ne, %12, %13 : vector<16x32xi32>
    %c0_i32_10 = arith.constant 0 : i32
    %15 = vector.broadcast %c0_i32_10 : i32 to vector<16x32xi32>
    %16 = arith.cmpi slt, %12, %15 : vector<16x32xi32>
    %c0_i32_11 = arith.constant 0 : i32
    %17 = arith.cmpi slt, %10, %c0_i32_11 : i32
    %18 = vector.broadcast %17 : i1 to vector<16x32xi1>
    %19 = vector.broadcast %18 : vector<16x32xi1> to vector<16x32xi1>
    %20 = arith.xori %16, %19 : vector<16x32xi1>
    %21 = arith.andi %20, %14 : vector<16x32xi1>
    %22 = vector.broadcast %10 : i32 to vector<16x32xi32>
    %23 = arith.addi %12, %22 : vector<16x32xi32>
    %24 = arith.select %21, %23, %12 : vector<16x32xi1>, vector<16x32xi32>
    %c2_i32 = arith.constant 2 : i32
    %25 = vector.broadcast %c2_i32 : i32 to vector<16x32xi32>
    %26 = arith.cmpi sge, %24, %25 : vector<16x32xi32>
    %cst_12 = arith.constant 0.000000e+00 : f32
    %27 = vector.broadcast %cst_12 : f32 to vector<16x32xf32>
    %28 = arith.select %26, %7, %27 : vector<16x32xi1>, vector<16x32xf32>
    %cst_13 = arith.constant 0.000000e+00 : f32
    %29 = vector.broadcast %cst_13 : f32 to vector<16x1xf32>
    %30 = vector.extract_strided_slice %0 {offsets = [0, 0], sizes = [16, 31], strides = [1, 1]} : vector<16x32xf32> to vector<16x31xf32>
    %31 = tpu.concatenate %29, %30 in 1 : vector<16x1xf32>, vector<16x31xf32> -> vector<16x32xf32>
    %32 = tpu.iota {dimensions = array<i32: 1>} : vector<16x32xi32>
    %c16_i32_14 = arith.constant 16 : i32
    %c0_i32_15 = arith.constant 0 : i32
    %33 = arith.cmpi eq, %c16_i32_14, %c0_i32_15 : i32
    %c1_i32_16 = arith.constant 1 : i32
    %34 = arith.select %33, %c1_i32_16, %c16_i32_14 : i32
    %35 = vector.broadcast %34 : i32 to vector<16x32xi32>
    %36 = arith.remsi %32, %35 : vector<16x32xi32>
    %c0_i32_17 = arith.constant 0 : i32
    %37 = vector.broadcast %c0_i32_17 : i32 to vector<16x32xi32>
    %38 = arith.cmpi ne, %36, %37 : vector<16x32xi32>
    %c0_i32_18 = arith.constant 0 : i32
    %39 = vector.broadcast %c0_i32_18 : i32 to vector<16x32xi32>
    %40 = arith.cmpi slt, %36, %39 : vector<16x32xi32>
    %c0_i32_19 = arith.constant 0 : i32
    %41 = arith.cmpi slt, %34, %c0_i32_19 : i32
    %42 = vector.broadcast %41 : i1 to vector<16x32xi1>
    %43 = vector.broadcast %42 : vector<16x32xi1> to vector<16x32xi1>
    %44 = arith.xori %40, %43 : vector<16x32xi1>
    %45 = arith.andi %44, %38 : vector<16x32xi1>
    %46 = vector.broadcast %34 : i32 to vector<16x32xi32>
    %47 = arith.addi %36, %46 : vector<16x32xi32>
    %48 = arith.select %45, %47, %36 : vector<16x32xi1>, vector<16x32xi32>
    %c1_i32_20 = arith.constant 1 : i32
    %49 = vector.broadcast %c1_i32_20 : i32 to vector<16x32xi32>
    %50 = arith.cmpi sge, %48, %49 : vector<16x32xi32>
    %cst_21 = arith.constant 0.000000e+00 : f32
    %51 = vector.broadcast %cst_21 : f32 to vector<16x32xf32>
    %52 = arith.select %50, %31, %51 : vector<16x32xi1>, vector<16x32xf32>
    %53 = tpu.concatenate %28, %52, %0 in 0 : vector<16x32xf32>, vector<16x32xf32>, vector<16x32xf32> -> vector<48x32xf32>
    %cst_22 = arith.constant dense<0.000000e+00> : vector<8x32xf32>
    %54 = tpu.matmul %1, %53, %cst_22 {dimension_numbers = #tpu.dot_dimension_numbers<[1], [0], [0], [1], [0, 0, 1, 1], [], []>} : vector<8x48xf32>, vector<48x32xf32>, vector<8x32xf32> -> vector<8x32xf32>
    %55 = vector.broadcast %2 : vector<8x1xf32> to vector<8x32xf32>
    %56 = arith.addf %54, %55 : vector<8x32xf32>
    %cst_23 = arith.constant 0.000000e+00 : f32
    %57 = vector.broadcast %cst_23 : f32 to vector<8x32xf32>
    %58 = arith.maximumf %56, %57 : vector<8x32xf32>
    %cst_24 = arith.constant 0.000000e+00 : f32
    %59 = vector.broadcast %cst_24 : f32 to vector<8x2xf32>
    %60 = vector.extract_strided_slice %58 {offsets = [0, 0], sizes = [8, 30], strides = [1, 1]} : vector<8x32xf32> to vector<8x30xf32>
    %61 = tpu.concatenate %59, %60 in 1 : vector<8x2xf32>, vector<8x30xf32> -> vector<8x32xf32>
    %62 = tpu.iota {dimensions = array<i32: 1>} : vector<8x32xi32>
    %c16_i32_25 = arith.constant 16 : i32
    %c0_i32_26 = arith.constant 0 : i32
    %63 = arith.cmpi eq, %c16_i32_25, %c0_i32_26 : i32
    %c1_i32_27 = arith.constant 1 : i32
    %64 = arith.select %63, %c1_i32_27, %c16_i32_25 : i32
    %65 = vector.broadcast %64 : i32 to vector<8x32xi32>
    %66 = arith.remsi %62, %65 : vector<8x32xi32>
    %c0_i32_28 = arith.constant 0 : i32
    %67 = vector.broadcast %c0_i32_28 : i32 to vector<8x32xi32>
    %68 = arith.cmpi ne, %66, %67 : vector<8x32xi32>
    %c0_i32_29 = arith.constant 0 : i32
    %69 = vector.broadcast %c0_i32_29 : i32 to vector<8x32xi32>
    %70 = arith.cmpi slt, %66, %69 : vector<8x32xi32>
    %c0_i32_30 = arith.constant 0 : i32
    %71 = arith.cmpi slt, %64, %c0_i32_30 : i32
    %72 = vector.broadcast %71 : i1 to vector<8x32xi1>
    %73 = vector.broadcast %72 : vector<8x32xi1> to vector<8x32xi1>
    %74 = arith.xori %70, %73 : vector<8x32xi1>
    %75 = arith.andi %74, %68 : vector<8x32xi1>
    %76 = vector.broadcast %64 : i32 to vector<8x32xi32>
    %77 = arith.addi %66, %76 : vector<8x32xi32>
    %78 = arith.select %75, %77, %66 : vector<8x32xi1>, vector<8x32xi32>
    %c2_i32_31 = arith.constant 2 : i32
    %79 = vector.broadcast %c2_i32_31 : i32 to vector<8x32xi32>
    %80 = arith.cmpi sge, %78, %79 : vector<8x32xi32>
    %cst_32 = arith.constant 0.000000e+00 : f32
    %81 = vector.broadcast %cst_32 : f32 to vector<8x32xf32>
    %82 = arith.select %80, %61, %81 : vector<8x32xi1>, vector<8x32xf32>
    %cst_33 = arith.constant 0.000000e+00 : f32
    %83 = vector.broadcast %cst_33 : f32 to vector<8x1xf32>
    %84 = vector.extract_strided_slice %58 {offsets = [0, 0], sizes = [8, 31], strides = [1, 1]} : vector<8x32xf32> to vector<8x31xf32>
    %85 = tpu.concatenate %83, %84 in 1 : vector<8x1xf32>, vector<8x31xf32> -> vector<8x32xf32>
    %86 = tpu.iota {dimensions = array<i32: 1>} : vector<8x32xi32>
    %c16_i32_34 = arith.constant 16 : i32
    %c0_i32_35 = arith.constant 0 : i32
    %87 = arith.cmpi eq, %c16_i32_34, %c0_i32_35 : i32
    %c1_i32_36 = arith.constant 1 : i32
    %88 = arith.select %87, %c1_i32_36, %c16_i32_34 : i32
    %89 = vector.broadcast %88 : i32 to vector<8x32xi32>
    %90 = arith.remsi %86, %89 : vector<8x32xi32>
    %c0_i32_37 = arith.constant 0 : i32
    %91 = vector.broadcast %c0_i32_37 : i32 to vector<8x32xi32>
    %92 = arith.cmpi ne, %90, %91 : vector<8x32xi32>
    %c0_i32_38 = arith.constant 0 : i32
    %93 = vector.broadcast %c0_i32_38 : i32 to vector<8x32xi32>
    %94 = arith.cmpi slt, %90, %93 : vector<8x32xi32>
    %c0_i32_39 = arith.constant 0 : i32
    %95 = arith.cmpi slt, %88, %c0_i32_39 : i32
    %96 = vector.broadcast %95 : i1 to vector<8x32xi1>
    %97 = vector.broadcast %96 : vector<8x32xi1> to vector<8x32xi1>
    %98 = arith.xori %94, %97 : vector<8x32xi1>
    %99 = arith.andi %98, %92 : vector<8x32xi1>
    %100 = vector.broadcast %88 : i32 to vector<8x32xi32>
    %101 = arith.addi %90, %100 : vector<8x32xi32>
    %102 = arith.select %99, %101, %90 : vector<8x32xi1>, vector<8x32xi32>
    %c1_i32_40 = arith.constant 1 : i32
    %103 = vector.broadcast %c1_i32_40 : i32 to vector<8x32xi32>
    %104 = arith.cmpi sge, %102, %103 : vector<8x32xi32>
    %cst_41 = arith.constant 0.000000e+00 : f32
    %105 = vector.broadcast %cst_41 : f32 to vector<8x32xf32>
    %106 = arith.select %104, %85, %105 : vector<8x32xi1>, vector<8x32xf32>
    %107 = tpu.concatenate %82, %106, %58 in 0 : vector<8x32xf32>, vector<8x32xf32>, vector<8x32xf32> -> vector<24x32xf32>
    %cst_42 = arith.constant dense<0.000000e+00> : vector<8x32xf32>
    %108 = tpu.matmul %3, %107, %cst_42 {dimension_numbers = #tpu.dot_dimension_numbers<[1], [0], [0], [1], [0, 0, 1, 1], [], []>} : vector<8x24xf32>, vector<24x32xf32>, vector<8x32xf32> -> vector<8x32xf32>
    %109 = vector.broadcast %4 : vector<8x1xf32> to vector<8x32xf32>
    %110 = arith.addf %108, %109 : vector<8x32xf32>
    %cst_43 = arith.constant 0.000000e+00 : f32
    %111 = vector.broadcast %cst_43 : f32 to vector<8x32xf32>
    %112 = arith.maximumf %110, %111 : vector<8x32xf32>
    %c0_44 = arith.constant 0 : index
    %c0_45 = arith.constant 0 : index
    %113 = vector.load %arg5[%c0_44, %c0_45] : memref<8x16xf32, #tpu.memory_space<vmem>>, vector<8x16xf32>
    %c0_46 = arith.constant 0 : index
    %c0_47 = arith.constant 0 : index
    %114 = vector.load %arg6[%c0_46, %c0_47] : memref<8x1xf32, #tpu.memory_space<vmem>>, vector<8x1xf32>
    %cst_48 = arith.constant dense<0.000000e+00> : vector<8x32xf32>
    %115 = tpu.matmul %113, %0, %cst_48 {dimension_numbers = #tpu.dot_dimension_numbers<[1], [0], [0], [1], [0, 0, 1, 1], [], []>} : vector<8x16xf32>, vector<16x32xf32>, vector<8x32xf32> -> vector<8x32xf32>
    %116 = vector.broadcast %114 : vector<8x1xf32> to vector<8x32xf32>
    %117 = arith.addf %115, %116 : vector<8x32xf32>
    %118 = arith.addf %112, %117 : vector<8x32xf32>
    %cst_49 = arith.constant 0.000000e+00 : f32
    %119 = vector.broadcast %cst_49 : f32 to vector<8x32xf32>
    %120 = arith.maximumf %118, %119 : vector<8x32xf32>
    %c0_50 = arith.constant 0 : index
    %c0_51 = arith.constant 0 : index
    %121 = vector.load %arg7[%c0_50, %c0_51] : memref<8x24xf32, #tpu.memory_space<vmem>>, vector<8x24xf32>
    %c0_52 = arith.constant 0 : index
    %c0_53 = arith.constant 0 : index
    %122 = vector.load %arg8[%c0_52, %c0_53] : memref<8x1xf32, #tpu.memory_space<vmem>>, vector<8x1xf32>
    %c0_54 = arith.constant 0 : index
    %c0_55 = arith.constant 0 : index
    %123 = vector.load %arg9[%c0_54, %c0_55] : memref<8x24xf32, #tpu.memory_space<vmem>>, vector<8x24xf32>
    %c0_56 = arith.constant 0 : index
    %c0_57 = arith.constant 0 : index
    %124 = vector.load %arg10[%c0_56, %c0_57] : memref<8x1xf32, #tpu.memory_space<vmem>>, vector<8x1xf32>
    %cst_58 = arith.constant 0.000000e+00 : f32
    %125 = vector.broadcast %cst_58 : f32 to vector<8x4xf32>
    %126 = vector.extract_strided_slice %120 {offsets = [0, 0], sizes = [8, 28], strides = [1, 1]} : vector<8x32xf32> to vector<8x28xf32>
    %127 = tpu.concatenate %125, %126 in 1 : vector<8x4xf32>, vector<8x28xf32> -> vector<8x32xf32>
    %128 = tpu.iota {dimensions = array<i32: 1>} : vector<8x32xi32>
    %c16_i32_59 = arith.constant 16 : i32
    %c0_i32_60 = arith.constant 0 : i32
    %129 = arith.cmpi eq, %c16_i32_59, %c0_i32_60 : i32
    %c1_i32_61 = arith.constant 1 : i32
    %130 = arith.select %129, %c1_i32_61, %c16_i32_59 : i32
    %131 = vector.broadcast %130 : i32 to vector<8x32xi32>
    %132 = arith.remsi %128, %131 : vector<8x32xi32>
    %c0_i32_62 = arith.constant 0 : i32
    %133 = vector.broadcast %c0_i32_62 : i32 to vector<8x32xi32>
    %134 = arith.cmpi ne, %132, %133 : vector<8x32xi32>
    %c0_i32_63 = arith.constant 0 : i32
    %135 = vector.broadcast %c0_i32_63 : i32 to vector<8x32xi32>
    %136 = arith.cmpi slt, %132, %135 : vector<8x32xi32>
    %c0_i32_64 = arith.constant 0 : i32
    %137 = arith.cmpi slt, %130, %c0_i32_64 : i32
    %138 = vector.broadcast %137 : i1 to vector<8x32xi1>
    %139 = vector.broadcast %138 : vector<8x32xi1> to vector<8x32xi1>
    %140 = arith.xori %136, %139 : vector<8x32xi1>
    %141 = arith.andi %140, %134 : vector<8x32xi1>
    %142 = vector.broadcast %130 : i32 to vector<8x32xi32>
    %143 = arith.addi %132, %142 : vector<8x32xi32>
    %144 = arith.select %141, %143, %132 : vector<8x32xi1>, vector<8x32xi32>
    %c4_i32 = arith.constant 4 : i32
    %145 = vector.broadcast %c4_i32 : i32 to vector<8x32xi32>
    %146 = arith.cmpi sge, %144, %145 : vector<8x32xi32>
    %cst_65 = arith.constant 0.000000e+00 : f32
    %147 = vector.broadcast %cst_65 : f32 to vector<8x32xf32>
    %148 = arith.select %146, %127, %147 : vector<8x32xi1>, vector<8x32xf32>
    %cst_66 = arith.constant 0.000000e+00 : f32
    %149 = vector.broadcast %cst_66 : f32 to vector<8x2xf32>
    %150 = vector.extract_strided_slice %120 {offsets = [0, 0], sizes = [8, 30], strides = [1, 1]} : vector<8x32xf32> to vector<8x30xf32>
    %151 = tpu.concatenate %149, %150 in 1 : vector<8x2xf32>, vector<8x30xf32> -> vector<8x32xf32>
    %152 = tpu.iota {dimensions = array<i32: 1>} : vector<8x32xi32>
    %c16_i32_67 = arith.constant 16 : i32
    %c0_i32_68 = arith.constant 0 : i32
    %153 = arith.cmpi eq, %c16_i32_67, %c0_i32_68 : i32
    %c1_i32_69 = arith.constant 1 : i32
    %154 = arith.select %153, %c1_i32_69, %c16_i32_67 : i32
    %155 = vector.broadcast %154 : i32 to vector<8x32xi32>
    %156 = arith.remsi %152, %155 : vector<8x32xi32>
    %c0_i32_70 = arith.constant 0 : i32
    %157 = vector.broadcast %c0_i32_70 : i32 to vector<8x32xi32>
    %158 = arith.cmpi ne, %156, %157 : vector<8x32xi32>
    %c0_i32_71 = arith.constant 0 : i32
    %159 = vector.broadcast %c0_i32_71 : i32 to vector<8x32xi32>
    %160 = arith.cmpi slt, %156, %159 : vector<8x32xi32>
    %c0_i32_72 = arith.constant 0 : i32
    %161 = arith.cmpi slt, %154, %c0_i32_72 : i32
    %162 = vector.broadcast %161 : i1 to vector<8x32xi1>
    %163 = vector.broadcast %162 : vector<8x32xi1> to vector<8x32xi1>
    %164 = arith.xori %160, %163 : vector<8x32xi1>
    %165 = arith.andi %164, %158 : vector<8x32xi1>
    %166 = vector.broadcast %154 : i32 to vector<8x32xi32>
    %167 = arith.addi %156, %166 : vector<8x32xi32>
    %168 = arith.select %165, %167, %156 : vector<8x32xi1>, vector<8x32xi32>
    %c2_i32_73 = arith.constant 2 : i32
    %169 = vector.broadcast %c2_i32_73 : i32 to vector<8x32xi32>
    %170 = arith.cmpi sge, %168, %169 : vector<8x32xi32>
    %cst_74 = arith.constant 0.000000e+00 : f32
    %171 = vector.broadcast %cst_74 : f32 to vector<8x32xf32>
    %172 = arith.select %170, %151, %171 : vector<8x32xi1>, vector<8x32xf32>
    %173 = tpu.concatenate %148, %172, %120 in 0 : vector<8x32xf32>, vector<8x32xf32>, vector<8x32xf32> -> vector<24x32xf32>
    %cst_75 = arith.constant dense<0.000000e+00> : vector<8x32xf32>
    %174 = tpu.matmul %121, %173, %cst_75 {dimension_numbers = #tpu.dot_dimension_numbers<[1], [0], [0], [1], [0, 0, 1, 1], [], []>} : vector<8x24xf32>, vector<24x32xf32>, vector<8x32xf32> -> vector<8x32xf32>
    %175 = vector.broadcast %122 : vector<8x1xf32> to vector<8x32xf32>
    %176 = arith.addf %174, %175 : vector<8x32xf32>
    %cst_76 = arith.constant 0.000000e+00 : f32
    %177 = vector.broadcast %cst_76 : f32 to vector<8x32xf32>
    %178 = arith.maximumf %176, %177 : vector<8x32xf32>
    %cst_77 = arith.constant 0.000000e+00 : f32
    %179 = vector.broadcast %cst_77 : f32 to vector<8x4xf32>
    %180 = vector.extract_strided_slice %178 {offsets = [0, 0], sizes = [8, 28], strides = [1, 1]} : vector<8x32xf32> to vector<8x28xf32>
    %181 = tpu.concatenate %179, %180 in 1 : vector<8x4xf32>, vector<8x28xf32> -> vector<8x32xf32>
    %182 = tpu.iota {dimensions = array<i32: 1>} : vector<8x32xi32>
    %c16_i32_78 = arith.constant 16 : i32
    %c0_i32_79 = arith.constant 0 : i32
    %183 = arith.cmpi eq, %c16_i32_78, %c0_i32_79 : i32
    %c1_i32_80 = arith.constant 1 : i32
    %184 = arith.select %183, %c1_i32_80, %c16_i32_78 : i32
    %185 = vector.broadcast %184 : i32 to vector<8x32xi32>
    %186 = arith.remsi %182, %185 : vector<8x32xi32>
    %c0_i32_81 = arith.constant 0 : i32
    %187 = vector.broadcast %c0_i32_81 : i32 to vector<8x32xi32>
    %188 = arith.cmpi ne, %186, %187 : vector<8x32xi32>
    %c0_i32_82 = arith.constant 0 : i32
    %189 = vector.broadcast %c0_i32_82 : i32 to vector<8x32xi32>
    %190 = arith.cmpi slt, %186, %189 : vector<8x32xi32>
    %c0_i32_83 = arith.constant 0 : i32
    %191 = arith.cmpi slt, %184, %c0_i32_83 : i32
    %192 = vector.broadcast %191 : i1 to vector<8x32xi1>
    %193 = vector.broadcast %192 : vector<8x32xi1> to vector<8x32xi1>
    %194 = arith.xori %190, %193 : vector<8x32xi1>
    %195 = arith.andi %194, %188 : vector<8x32xi1>
    %196 = vector.broadcast %184 : i32 to vector<8x32xi32>
    %197 = arith.addi %186, %196 : vector<8x32xi32>
    %198 = arith.select %195, %197, %186 : vector<8x32xi1>, vector<8x32xi32>
    %c4_i32_84 = arith.constant 4 : i32
    %199 = vector.broadcast %c4_i32_84 : i32 to vector<8x32xi32>
    %200 = arith.cmpi sge, %198, %199 : vector<8x32xi32>
    %cst_85 = arith.constant 0.000000e+00 : f32
    %201 = vector.broadcast %cst_85 : f32 to vector<8x32xf32>
    %202 = arith.select %200, %181, %201 : vector<8x32xi1>, vector<8x32xf32>
    %cst_86 = arith.constant 0.000000e+00 : f32
    %203 = vector.broadcast %cst_86 : f32 to vector<8x2xf32>
    %204 = vector.extract_strided_slice %178 {offsets = [0, 0], sizes = [8, 30], strides = [1, 1]} : vector<8x32xf32> to vector<8x30xf32>
    %205 = tpu.concatenate %203, %204 in 1 : vector<8x2xf32>, vector<8x30xf32> -> vector<8x32xf32>
    %206 = tpu.iota {dimensions = array<i32: 1>} : vector<8x32xi32>
    %c16_i32_87 = arith.constant 16 : i32
    %c0_i32_88 = arith.constant 0 : i32
    %207 = arith.cmpi eq, %c16_i32_87, %c0_i32_88 : i32
    %c1_i32_89 = arith.constant 1 : i32
    %208 = arith.select %207, %c1_i32_89, %c16_i32_87 : i32
    %209 = vector.broadcast %208 : i32 to vector<8x32xi32>
    %210 = arith.remsi %206, %209 : vector<8x32xi32>
    %c0_i32_90 = arith.constant 0 : i32
    %211 = vector.broadcast %c0_i32_90 : i32 to vector<8x32xi32>
    %212 = arith.cmpi ne, %210, %211 : vector<8x32xi32>
    %c0_i32_91 = arith.constant 0 : i32
    %213 = vector.broadcast %c0_i32_91 : i32 to vector<8x32xi32>
    %214 = arith.cmpi slt, %210, %213 : vector<8x32xi32>
    %c0_i32_92 = arith.constant 0 : i32
    %215 = arith.cmpi slt, %208, %c0_i32_92 : i32
    %216 = vector.broadcast %215 : i1 to vector<8x32xi1>
    %217 = vector.broadcast %216 : vector<8x32xi1> to vector<8x32xi1>
    %218 = arith.xori %214, %217 : vector<8x32xi1>
    %219 = arith.andi %218, %212 : vector<8x32xi1>
    %220 = vector.broadcast %208 : i32 to vector<8x32xi32>
    %221 = arith.addi %210, %220 : vector<8x32xi32>
    %222 = arith.select %219, %221, %210 : vector<8x32xi1>, vector<8x32xi32>
    %c2_i32_93 = arith.constant 2 : i32
    %223 = vector.broadcast %c2_i32_93 : i32 to vector<8x32xi32>
    %224 = arith.cmpi sge, %222, %223 : vector<8x32xi32>
    %cst_94 = arith.constant 0.000000e+00 : f32
    %225 = vector.broadcast %cst_94 : f32 to vector<8x32xf32>
    %226 = arith.select %224, %205, %225 : vector<8x32xi1>, vector<8x32xf32>
    %227 = tpu.concatenate %202, %226, %178 in 0 : vector<8x32xf32>, vector<8x32xf32>, vector<8x32xf32> -> vector<24x32xf32>
    %cst_95 = arith.constant dense<0.000000e+00> : vector<8x32xf32>
    %228 = tpu.matmul %123, %227, %cst_95 {dimension_numbers = #tpu.dot_dimension_numbers<[1], [0], [0], [1], [0, 0, 1, 1], [], []>} : vector<8x24xf32>, vector<24x32xf32>, vector<8x32xf32> -> vector<8x32xf32>
    %229 = vector.broadcast %124 : vector<8x1xf32> to vector<8x32xf32>
    %230 = arith.addf %228, %229 : vector<8x32xf32>
    %cst_96 = arith.constant 0.000000e+00 : f32
    %231 = vector.broadcast %cst_96 : f32 to vector<8x32xf32>
    %232 = arith.maximumf %230, %231 : vector<8x32xf32>
    %233 = arith.addf %232, %120 : vector<8x32xf32>
    %cst_97 = arith.constant 0.000000e+00 : f32
    %234 = vector.broadcast %cst_97 : f32 to vector<8x32xf32>
    %235 = arith.maximumf %233, %234 : vector<8x32xf32>
    %c0_98 = arith.constant 0 : index
    %c0_99 = arith.constant 0 : index
    %236 = vector.load %arg11[%c0_98, %c0_99] : memref<8x24xf32, #tpu.memory_space<vmem>>, vector<8x24xf32>
    %c0_100 = arith.constant 0 : index
    %c0_101 = arith.constant 0 : index
    %237 = vector.load %arg12[%c0_100, %c0_101] : memref<8x1xf32, #tpu.memory_space<vmem>>, vector<8x1xf32>
    %c0_102 = arith.constant 0 : index
    %c0_103 = arith.constant 0 : index
    %238 = vector.load %arg13[%c0_102, %c0_103] : memref<8x24xf32, #tpu.memory_space<vmem>>, vector<8x24xf32>
    %c0_104 = arith.constant 0 : index
    %c0_105 = arith.constant 0 : index
    %239 = vector.load %arg14[%c0_104, %c0_105] : memref<8x1xf32, #tpu.memory_space<vmem>>, vector<8x1xf32>
    %cst_106 = arith.constant 0.000000e+00 : f32
    %240 = vector.broadcast %cst_106 : f32 to vector<8x8xf32>
    %241 = vector.extract_strided_slice %235 {offsets = [0, 0], sizes = [8, 24], strides = [1, 1]} : vector<8x32xf32> to vector<8x24xf32>
    %242 = tpu.concatenate %240, %241 in 1 : vector<8x8xf32>, vector<8x24xf32> -> vector<8x32xf32>
    %243 = tpu.iota {dimensions = array<i32: 1>} : vector<8x32xi32>
    %c16_i32_107 = arith.constant 16 : i32
    %c0_i32_108 = arith.constant 0 : i32
    %244 = arith.cmpi eq, %c16_i32_107, %c0_i32_108 : i32
    %c1_i32_109 = arith.constant 1 : i32
    %245 = arith.select %244, %c1_i32_109, %c16_i32_107 : i32
    %246 = vector.broadcast %245 : i32 to vector<8x32xi32>
    %247 = arith.remsi %243, %246 : vector<8x32xi32>
    %c0_i32_110 = arith.constant 0 : i32
    %248 = vector.broadcast %c0_i32_110 : i32 to vector<8x32xi32>
    %249 = arith.cmpi ne, %247, %248 : vector<8x32xi32>
    %c0_i32_111 = arith.constant 0 : i32
    %250 = vector.broadcast %c0_i32_111 : i32 to vector<8x32xi32>
    %251 = arith.cmpi slt, %247, %250 : vector<8x32xi32>
    %c0_i32_112 = arith.constant 0 : i32
    %252 = arith.cmpi slt, %245, %c0_i32_112 : i32
    %253 = vector.broadcast %252 : i1 to vector<8x32xi1>
    %254 = vector.broadcast %253 : vector<8x32xi1> to vector<8x32xi1>
    %255 = arith.xori %251, %254 : vector<8x32xi1>
    %256 = arith.andi %255, %249 : vector<8x32xi1>
    %257 = vector.broadcast %245 : i32 to vector<8x32xi32>
    %258 = arith.addi %247, %257 : vector<8x32xi32>
    %259 = arith.select %256, %258, %247 : vector<8x32xi1>, vector<8x32xi32>
    %c8_i32 = arith.constant 8 : i32
    %260 = vector.broadcast %c8_i32 : i32 to vector<8x32xi32>
    %261 = arith.cmpi sge, %259, %260 : vector<8x32xi32>
    %cst_113 = arith.constant 0.000000e+00 : f32
    %262 = vector.broadcast %cst_113 : f32 to vector<8x32xf32>
    %263 = arith.select %261, %242, %262 : vector<8x32xi1>, vector<8x32xf32>
    %cst_114 = arith.constant 0.000000e+00 : f32
    %264 = vector.broadcast %cst_114 : f32 to vector<8x4xf32>
    %265 = vector.extract_strided_slice %235 {offsets = [0, 0], sizes = [8, 28], strides = [1, 1]} : vector<8x32xf32> to vector<8x28xf32>
    %266 = tpu.concatenate %264, %265 in 1 : vector<8x4xf32>, vector<8x28xf32> -> vector<8x32xf32>
    %267 = tpu.iota {dimensions = array<i32: 1>} : vector<8x32xi32>
    %c16_i32_115 = arith.constant 16 : i32
    %c0_i32_116 = arith.constant 0 : i32
    %268 = arith.cmpi eq, %c16_i32_115, %c0_i32_116 : i32
    %c1_i32_117 = arith.constant 1 : i32
    %269 = arith.select %268, %c1_i32_117, %c16_i32_115 : i32
    %270 = vector.broadcast %269 : i32 to vector<8x32xi32>
    %271 = arith.remsi %267, %270 : vector<8x32xi32>
    %c0_i32_118 = arith.constant 0 : i32
    %272 = vector.broadcast %c0_i32_118 : i32 to vector<8x32xi32>
    %273 = arith.cmpi ne, %271, %272 : vector<8x32xi32>
    %c0_i32_119 = arith.constant 0 : i32
    %274 = vector.broadcast %c0_i32_119 : i32 to vector<8x32xi32>
    %275 = arith.cmpi slt, %271, %274 : vector<8x32xi32>
    %c0_i32_120 = arith.constant 0 : i32
    %276 = arith.cmpi slt, %269, %c0_i32_120 : i32
    %277 = vector.broadcast %276 : i1 to vector<8x32xi1>
    %278 = vector.broadcast %277 : vector<8x32xi1> to vector<8x32xi1>
    %279 = arith.xori %275, %278 : vector<8x32xi1>
    %280 = arith.andi %279, %273 : vector<8x32xi1>
    %281 = vector.broadcast %269 : i32 to vector<8x32xi32>
    %282 = arith.addi %271, %281 : vector<8x32xi32>
    %283 = arith.select %280, %282, %271 : vector<8x32xi1>, vector<8x32xi32>
    %c4_i32_121 = arith.constant 4 : i32
    %284 = vector.broadcast %c4_i32_121 : i32 to vector<8x32xi32>
    %285 = arith.cmpi sge, %283, %284 : vector<8x32xi32>
    %cst_122 = arith.constant 0.000000e+00 : f32
    %286 = vector.broadcast %cst_122 : f32 to vector<8x32xf32>
    %287 = arith.select %285, %266, %286 : vector<8x32xi1>, vector<8x32xf32>
    %288 = tpu.concatenate %263, %287, %235 in 0 : vector<8x32xf32>, vector<8x32xf32>, vector<8x32xf32> -> vector<24x32xf32>
    %cst_123 = arith.constant dense<0.000000e+00> : vector<8x32xf32>
    %289 = tpu.matmul %236, %288, %cst_123 {dimension_numbers = #tpu.dot_dimension_numbers<[1], [0], [0], [1], [0, 0, 1, 1], [], []>} : vector<8x24xf32>, vector<24x32xf32>, vector<8x32xf32> -> vector<8x32xf32>
    %290 = vector.broadcast %237 : vector<8x1xf32> to vector<8x32xf32>
    %291 = arith.addf %289, %290 : vector<8x32xf32>
    %cst_124 = arith.constant 0.000000e+00 : f32
    %292 = vector.broadcast %cst_124 : f32 to vector<8x32xf32>
    %293 = arith.maximumf %291, %292 : vector<8x32xf32>
    %cst_125 = arith.constant 0.000000e+00 : f32
    %294 = vector.broadcast %cst_125 : f32 to vector<8x8xf32>
    %295 = vector.extract_strided_slice %293 {offsets = [0, 0], sizes = [8, 24], strides = [1, 1]} : vector<8x32xf32> to vector<8x24xf32>
    %296 = tpu.concatenate %294, %295 in 1 : vector<8x8xf32>, vector<8x24xf32> -> vector<8x32xf32>
    %297 = tpu.iota {dimensions = array<i32: 1>} : vector<8x32xi32>
    %c16_i32_126 = arith.constant 16 : i32
    %c0_i32_127 = arith.constant 0 : i32
    %298 = arith.cmpi eq, %c16_i32_126, %c0_i32_127 : i32
    %c1_i32_128 = arith.constant 1 : i32
    %299 = arith.select %298, %c1_i32_128, %c16_i32_126 : i32
    %300 = vector.broadcast %299 : i32 to vector<8x32xi32>
    %301 = arith.remsi %297, %300 : vector<8x32xi32>
    %c0_i32_129 = arith.constant 0 : i32
    %302 = vector.broadcast %c0_i32_129 : i32 to vector<8x32xi32>
    %303 = arith.cmpi ne, %301, %302 : vector<8x32xi32>
    %c0_i32_130 = arith.constant 0 : i32
    %304 = vector.broadcast %c0_i32_130 : i32 to vector<8x32xi32>
    %305 = arith.cmpi slt, %301, %304 : vector<8x32xi32>
    %c0_i32_131 = arith.constant 0 : i32
    %306 = arith.cmpi slt, %299, %c0_i32_131 : i32
    %307 = vector.broadcast %306 : i1 to vector<8x32xi1>
    %308 = vector.broadcast %307 : vector<8x32xi1> to vector<8x32xi1>
    %309 = arith.xori %305, %308 : vector<8x32xi1>
    %310 = arith.andi %309, %303 : vector<8x32xi1>
    %311 = vector.broadcast %299 : i32 to vector<8x32xi32>
    %312 = arith.addi %301, %311 : vector<8x32xi32>
    %313 = arith.select %310, %312, %301 : vector<8x32xi1>, vector<8x32xi32>
    %c8_i32_132 = arith.constant 8 : i32
    %314 = vector.broadcast %c8_i32_132 : i32 to vector<8x32xi32>
    %315 = arith.cmpi sge, %313, %314 : vector<8x32xi32>
    %cst_133 = arith.constant 0.000000e+00 : f32
    %316 = vector.broadcast %cst_133 : f32 to vector<8x32xf32>
    %317 = arith.select %315, %296, %316 : vector<8x32xi1>, vector<8x32xf32>
    %cst_134 = arith.constant 0.000000e+00 : f32
    %318 = vector.broadcast %cst_134 : f32 to vector<8x4xf32>
    %319 = vector.extract_strided_slice %293 {offsets = [0, 0], sizes = [8, 28], strides = [1, 1]} : vector<8x32xf32> to vector<8x28xf32>
    %320 = tpu.concatenate %318, %319 in 1 : vector<8x4xf32>, vector<8x28xf32> -> vector<8x32xf32>
    %321 = tpu.iota {dimensions = array<i32: 1>} : vector<8x32xi32>
    %c16_i32_135 = arith.constant 16 : i32
    %c0_i32_136 = arith.constant 0 : i32
    %322 = arith.cmpi eq, %c16_i32_135, %c0_i32_136 : i32
    %c1_i32_137 = arith.constant 1 : i32
    %323 = arith.select %322, %c1_i32_137, %c16_i32_135 : i32
    %324 = vector.broadcast %323 : i32 to vector<8x32xi32>
    %325 = arith.remsi %321, %324 : vector<8x32xi32>
    %c0_i32_138 = arith.constant 0 : i32
    %326 = vector.broadcast %c0_i32_138 : i32 to vector<8x32xi32>
    %327 = arith.cmpi ne, %325, %326 : vector<8x32xi32>
    %c0_i32_139 = arith.constant 0 : i32
    %328 = vector.broadcast %c0_i32_139 : i32 to vector<8x32xi32>
    %329 = arith.cmpi slt, %325, %328 : vector<8x32xi32>
    %c0_i32_140 = arith.constant 0 : i32
    %330 = arith.cmpi slt, %323, %c0_i32_140 : i32
    %331 = vector.broadcast %330 : i1 to vector<8x32xi1>
    %332 = vector.broadcast %331 : vector<8x32xi1> to vector<8x32xi1>
    %333 = arith.xori %329, %332 : vector<8x32xi1>
    %334 = arith.andi %333, %327 : vector<8x32xi1>
    %335 = vector.broadcast %323 : i32 to vector<8x32xi32>
    %336 = arith.addi %325, %335 : vector<8x32xi32>
    %337 = arith.select %334, %336, %325 : vector<8x32xi1>, vector<8x32xi32>
    %c4_i32_141 = arith.constant 4 : i32
    %338 = vector.broadcast %c4_i32_141 : i32 to vector<8x32xi32>
    %339 = arith.cmpi sge, %337, %338 : vector<8x32xi32>
    %cst_142 = arith.constant 0.000000e+00 : f32
    %340 = vector.broadcast %cst_142 : f32 to vector<8x32xf32>
    %341 = arith.select %339, %320, %340 : vector<8x32xi1>, vector<8x32xf32>
    %342 = tpu.concatenate %317, %341, %293 in 0 : vector<8x32xf32>, vector<8x32xf32>, vector<8x32xf32> -> vector<24x32xf32>
    %cst_143 = arith.constant dense<0.000000e+00> : vector<8x32xf32>
    %343 = tpu.matmul %238, %342, %cst_143 {dimension_numbers = #tpu.dot_dimension_numbers<[1], [0], [0], [1], [0, 0, 1, 1], [], []>} : vector<8x24xf32>, vector<24x32xf32>, vector<8x32xf32> -> vector<8x32xf32>
    %344 = vector.broadcast %239 : vector<8x1xf32> to vector<8x32xf32>
    %345 = arith.addf %343, %344 : vector<8x32xf32>
    %cst_144 = arith.constant 0.000000e+00 : f32
    %346 = vector.broadcast %cst_144 : f32 to vector<8x32xf32>
    %347 = arith.maximumf %345, %346 : vector<8x32xf32>
    %348 = arith.addf %347, %235 : vector<8x32xf32>
    %cst_145 = arith.constant 0.000000e+00 : f32
    %349 = vector.broadcast %cst_145 : f32 to vector<8x32xf32>
    %350 = arith.maximumf %348, %349 : vector<8x32xf32>
    %c0_146 = arith.constant 0 : index
    %c0_147 = arith.constant 0 : index
    %351 = vector.load %arg15[%c0_146, %c0_147] : memref<8x32xf32, #tpu.memory_space<vmem>>, vector<8x32xf32>
    tpu.vector_store %arg15[%c0_146, %c0_147], %350 {strides = array<i32>} : memref<8x32xf32, #tpu.memory_space<vmem>>, vector<8x32xf32>,
    return
  }
}

</mosaic_0001>

<bundles_post_ra>
// kernel: temporal_conv_net.1
= control target key start
LH: loop header
LB: loop body
LE: loop exit
PB: predicated region body
PF: predicated region fallthrough
CT: control target
= control target key end

     0   :  { %v859_v1 = vmov 0.0   ;;  %s860_s20 = smov 1   ;;  %s861_s21 = smov 2   ;;  %vm862_vm0 = vmmov 0   ;;  %v863_v3 = vmov 0   ;;  %v67_v6 = vlaneseq  ;;  %s1111_s0 = inlined_call_operand.vmem [shape: f32[16,32], index: 0, kind: input, shape index: {}]   ;;  %s1112_s2 = inlined_call_operand.vmem [shape: f32[8,1], index: 2, kind: input, shape index: {}]   ;;  %s1113_s4 = inlined_call_operand.vmem [shape: f32[8,1], index: 4, kind: input, shape index: {}]   ;;  %s1114_s1 = inlined_call_operand.vmem [shape: f32[8,48], index: 1, kind: input, shape index: {}]   ;;  %s1115_s6 = inlined_call_operand.vmem [shape: f32[8,1], index: 6, kind: input, shape index: {}]   ;;  %s1116_s3 = inlined_call_operand.vmem [shape: f32[8,24], index: 3, kind: input, shape index: {}]   ;;  %s1117_s5 = inlined_call_operand.vmem [shape: f32[8,16], index: 5, kind: input, shape index: {}]   ;;  %s1118_s8 = inlined_call_operand.vmem [shape: f32[8,1], index: 8, kind: input, shape index: {}]   ;;  %s1119_s7 = inlined_call_operand.vmem [shape: f32[8,24], index: 7, kind: input, shape index: {}]   ;;  %s1120_s10 = inlined_call_operand.vmem [shape: f32[8,1], index: 10, kind: input, shape index: {}]   ;;  %s1121_s9 = inlined_call_operand.vmem [shape: f32[8,24], index: 9, kind: input, shape index: {}]   ;;  %s1122_s12 = inlined_call_operand.vmem [shape: f32[8,1], index: 12, kind: input, shape index: {}]   ;;  %s1123_s11 = inlined_call_operand.vmem [shape: f32[8,24], index: 11, kind: input, shape index: {}]   ;;  %s1124_s14 = inlined_call_operand.vmem [shape: f32[8,1], index: 14, kind: input, shape index: {}]   ;;  %s1125_s13 = inlined_call_operand.vmem [shape: f32[8,24], index: 13, kind: input, shape index: {}]   ;;  %s1126_s15 = inlined_call_operand.vmem [shape: f32[8,32], index: 15, kind: output, shape index: {}]  }
   0x1   :  { %v949_v0 = vld [vmem:[%s1111_s0 + $0x8] sm:$0xff]  ;;  %783 = vmatprep.subr.mxu0 %v859_v1  ;;  %798 = vmatprep.subr.mxu1 %v859_v1  ;;  %v960_v2 = vld [vmem:[%s1111_s0] sm:$0xff]  ;;  %vm90_vm1 = vcmask 7168   ;;  %vm64_vm3 = vcmask 15360   ;;  %vm101_vm5 = vcmask 392192   ;;  %vm192_vm6 = vcmask 195584  }
   0x2   :  { %86 = vrot.lane.b32.xlu0 %v949_v0, %s860_s20  ;;  %60 = vrot.lane.b32.xlu1 %v949_v0, %s861_s21  ;;  %v53_v4 = vld [vmem:[%s1112_s2] sm:$0xff]  ;;  %v68_v7 = vand.u32 127, %v67_v6  ;;  %vm274_vm7 = vcmask 130048   ;;  %vm358_vm8 = vcmask 31744   ;;  %vm546_vm10 = vcmask 64512  }
   0x3   :  { %784 = vmatpush3.msra.mxu0 %v949_v0  ;;  %795 = vmatprep.mubr.msk.f32.mxu0 %vm862_vm0, %v859_v1  ;;  %v55_v5 = vld [vmem:[%s1113_s4] sm:$0xff]  ;;  %vm726_vm12 = vcmask 261120  }
   0x4   :  { %785 = vmatprep.subr.mxu0 %v859_v1  ;;  %857 = vset.pattern.permute.xlu0 %v863_v3  ;;  %v980_v8 = vand.u32 15, %v68_v7  ;;  %v52_v17 = vld [vmem:[%s1114_s1] sm:$0xff] }
   0x5   :  { %786 = vmatpush3.msra.mxu0 %v960_v2  ;;  %804 = vmatprep.mubr.msk.f32.mxu1 %vm862_vm0, %v859_v1  ;;  %v268_v23 = vld [vmem:[%s1115_s6] sm:$0xff] }
   0x6   :  { %84 = vrot.lane.b32.xlu0 %v960_v2, %s860_s20  ;;  %58 = vrot.lane.b32.xlu1 %v960_v2, %s861_s21  ;;  %vm93_vm2 = vcmp.ge.s32.totalorder %v980_v8, 1  ;;  %vm81_vm4 = vcmp.ge.s32.totalorder %v980_v8, 2  ;;  %v54_v27 = vld [vmem:[%s1116_s3] sm:$0xff]  ;;  %s864_s3 = smov 4   ;;  %vm360_vm9 = vcmp.ge.s32.totalorder %v980_v8, 4  ;;  %vm548_vm11 = vcmp.ge.s32.totalorder %v980_v8, 8 }
   0x7   :  { %787 = vmatprep.subr.mxu0 %v859_v1  ;;  %858 = vset.pattern.permute.xlu1 %v863_v3  ;;  %v267_v29 = vld [vmem:[%s1117_s5] sm:$0xff] }
   0x8   :  { %v351_v41 = vld [vmem:[%s1118_s8] sm:$0xff] }
   0x9   :  { %v350_v45 = vld [vmem:[%s1119_s7] sm:$0xff] }
   0xa   :  { %98 = vperm.xlu0 %857, %v53_v4   ;;  %v353_v52 = vld [vmem:[%s1120_s10] sm:$0xff] }
   0xb   :  { %v352_v56 = vld [vmem:[%s1121_s9] sm:$0xff]  ;;  %s865_s9 = smov 8  }
   0xc   :  { %v538_v6 = vld [vmem:[%s1123_s11] sm:$0xff] }
   0xe   :  { %189 = vperm.xlu0 %857, %v55_v5  }
  0x74   :  { %v87_v9 = vpop.permute.xlu0 %86  ;;  %v61_v10 = vpop.permute.xlu1 %60 }
  0x75   :  { %v92_v11 = vsel %vm90_vm1, 0.0, %v87_v9  ;;  %v66_v15 = vsel %vm64_vm3, 0.0, %v61_v10 }
  0x76   :  { %788 = vmatpush3.msk.msra.mxu0 %vm93_vm2, %v92_v11 }
  0x77   :  { %789 = vmatprep.subr.mxu0 %v859_v1 }
  0x78   :  { %v85_v12 = vpop.permute.xlu0 %84  ;;  %v59_v13 = vpop.permute.xlu1 %58 }
  0x79   :  { %v91_v14 = vsel %vm90_vm1, 0.0, %v85_v12  ;;  %v65_v16 = vsel %vm64_vm3, 0.0, %v59_v13 }
  0x7a   :  { %790 = vmatpush3.msk.msra.mxu0 %vm93_vm2, %v91_v14  ;;  %v541_v14 = vld [vmem:[%s1124_s14] sm:$0xff] }
  0x7b   :  { %791 = vmatprep.subr.mxu0 %v859_v1 }
  0x7c   :  { %792 = vmatpush3.msk.msra.mxu0 %vm81_vm4, %v66_v15 }
  0x7d   :  { %793 = vmatprep.subr.mxu0 %v859_v1 }
  0x7e   :  { %794 = vmatpush3.msk.msra.mxu0 %vm81_vm4, %v65_v16 }
  0x7f   :  { %796 = vmatmul.mubr.msk.f32.vlgmr.msra.gmra.mxu0 %vm101_vm5, %v52_v17  ;;  %823 = vmatprep.subr.mxu0 %v859_v1 }
  0x80   :  { %829 = vmatprep.mubr.msk.f32.mxu0 %vm862_vm0, %v859_v1 }
  0x85   :  { %v99_v18 = vpop.permute.xlu0 %98 }
  0x89   :  { %v190_v30 = vpop.permute.xlu0 %189 }
 0x13f   :  { %v171_v19 = vpop.f32.mrf.mxu0 }
 0x140   :  { %v172_v20 = vadd.f32 %v171_v19, %v99_v18  ;;  %v540_v18 = vld [vmem:[%s1125_s13] sm:$0xff] }
 0x141   :  { %v797_v21 = vpop.f32.mrf.mxu0 }
 0x142   :  { %v175_v22 = vmax.f32 %v172_v20, 0.0 }
 0x144   :  { %182 = vrot.lane.b32.xlu1 %v175_v22, %s860_s20  ;;  %799 = vmatpush3.msra.mxu1 %v175_v22 }
 0x145   :  { %800 = vmatprep.subr.mxu1 %v859_v1 }
 0x148   :  { %177 = vrot.lane.b32.xlu1 %v175_v22, %s861_s21 }
 0x14c   :  { %271 = vperm.xlu1 %858, %v268_v23  }
 0x1b6   :  { %v183_v24 = vpop.permute.xlu1 %182 }
 0x1b7   :  { %v185_v25 = vsel %vm90_vm1, 0.0, %v183_v24 }
 0x1b8   :  { %801 = vmatpush3.msk.msra.mxu1 %vm93_vm2, %v185_v25 }
 0x1b9   :  { %802 = vmatprep.subr.mxu1 %v859_v1 }
 0x1ba   :  { %v178_v26 = vpop.permute.xlu1 %177 }
 0x1bb   :  { %v180_v28 = vsel %vm64_vm3, 0.0, %v178_v26 }
 0x1bc   :  { %803 = vmatpush3.msk.msra.mxu1 %vm81_vm4, %v180_v28 }
 0x1bd   :  { %805 = vmatmul.mubr.msk.f32.vlgmr.msra.gmra.mxu1 %vm192_vm6, %v54_v27  ;;  %807 = vmatprep.subr.mxu1 %v859_v1 }
 0x1be   :  { %808 = vmatpush3.msra.mxu1 %v949_v0  ;;  %811 = vmatprep.mubr.msk.f32.mxu1 %vm862_vm0, %v859_v1 }
 0x1bf   :  { %809 = vmatprep.subr.mxu1 %v859_v1 }
 0x1c0   :  { %810 = vmatpush3.msra.mxu1 %v960_v2  ;;  %v539_v2 = vld [vmem:[%s1122_s12] sm:$0xff] }
 0x1c1   :  { %812 = vmatmul.mubr.msk.f32.vlgmr.msra.gmra.mxu1 %vm274_vm7, %v267_v29  ;;  %814 = vmatprep.subr.mxu1 %v859_v1 }
 0x1c2   :  { %820 = vmatprep.mubr.msk.f32.mxu1 %vm862_vm0, %v859_v1 }
 0x1c7   :  { %v272_v34 = vpop.permute.xlu1 %271 }
 0x27d   :  { %v262_v31 = vpop.f32.mrf.mxu1 }
 0x27e   :  { %v263_v32 = vadd.f32 %v262_v31, %v190_v30 }
 0x27f   :  { %v806_v33 = vpop.f32.mrf.mxu1 }
 0x280   :  { %v266_v36 = vmax.f32 %v263_v32, 0.0 }
 0x281   :  { %v344_v35 = vpop.f32.mrf.mxu1 }
 0x282   :  { %v345_v37 = vadd.f32 %v344_v35, %v272_v34 }
 0x283   :  { %v813_v38 = vpop.f32.mrf.mxu1 }
 0x284   :  { %v348_v39 = vadd.f32 %v345_v37, %v266_v36 }
 0x286   :  { %v349_v40 = vmax.f32 %v348_v39, 0.0 }
 0x288   :  { %355 = vrot.lane.b32.xlu1 %v349_v40, %s864_s3  ;;  %362 = vrot.lane.b32.xlu0 %v349_v40, %s861_s21 }
 0x289   :  { %815 = vmatpush3.msra.mxu1 %v349_v40 }
 0x28a   :  { %816 = vmatprep.subr.mxu1 %v859_v1 }
 0x28c   :  { %369 = vperm.xlu0 %857, %v351_v41  }
 0x2fa   :  { %v356_v42 = vpop.permute.xlu1 %355  ;;  %v363_v43 = vpop.permute.xlu0 %362 }
 0x2fb   :  { %v365_v44 = vsel %vm64_vm3, 0.0, %v363_v43  ;;  %v359_v46 = vsel %vm358_vm8, 0.0, %v356_v42 }
 0x2fc   :  { %817 = vmatpush3.msk.msra.mxu1 %vm81_vm4, %v365_v44 }
 0x2fd   :  { %818 = vmatprep.subr.mxu1 %v859_v1 }
 0x2fe   :  { %819 = vmatpush3.msk.msra.mxu1 %vm360_vm9, %v359_v46 }
 0x2ff   :  { %821 = vmatmul.mubr.msk.f32.vlgmr.msra.gmra.mxu1 %vm192_vm6, %v350_v45  ;;  %832 = vmatprep.subr.mxu1 %v859_v1 }
 0x300   :  { %838 = vmatprep.mubr.msk.f32.mxu1 %vm862_vm0, %v859_v1 }
 0x307   :  { %v370_v47 = vpop.permute.xlu0 %369 }
 0x3bf   :  { %v441_v48 = vpop.f32.mrf.mxu1 }
 0x3c0   :  { %v442_v49 = vadd.f32 %v441_v48, %v370_v47 }
 0x3c1   :  { %v822_v50 = vpop.f32.mrf.mxu1 }
 0x3c2   :  { %v445_v51 = vmax.f32 %v442_v49, 0.0 }
 0x3c4   :  { %447 = vrot.lane.b32.xlu0 %v445_v51, %s864_s3  ;;  %452 = vrot.lane.b32.xlu1 %v445_v51, %s861_s21 }
 0x3c5   :  { %824 = vmatpush3.msra.mxu0 %v445_v51 }
 0x3c6   :  { %825 = vmatprep.subr.mxu0 %v859_v1 }
 0x3c8   :  { %459 = vperm.xlu1 %858, %v353_v52  }
 0x436   :  { %v448_v53 = vpop.permute.xlu0 %447  ;;  %v453_v54 = vpop.permute.xlu1 %452 }
 0x437   :  { %v455_v55 = vsel %vm64_vm3, 0.0, %v453_v54  ;;  %v450_v57 = vsel %vm358_vm8, 0.0, %v448_v53 }
 0x438   :  { %826 = vmatpush3.msk.msra.mxu0 %vm81_vm4, %v455_v55 }
 0x439   :  { %827 = vmatprep.subr.mxu0 %v859_v1 }
 0x43a   :  { %828 = vmatpush3.msk.msra.mxu0 %vm360_vm9, %v450_v57 }
 0x43b   :  { %830 = vmatmul.mubr.msk.f32.vlgmr.msra.gmra.mxu0 %vm192_vm6, %v352_v56  ;;  %841 = vmatprep.subr.mxu0 %v859_v1 }
 0x43c   :  { %847 = vmatprep.mubr.msk.f32.mxu0 %vm862_vm0, %v859_v1 }
 0x443   :  { %v460_v58 = vpop.permute.xlu1 %459 }
 0x4fb   :  { %v531_v59 = vpop.f32.mrf.mxu0 }
 0x4fc   :  { %v532_v60 = vadd.f32 %v531_v59, %v460_v58 }
 0x4fd   :  { %v831_v61 = vpop.f32.mrf.mxu0 }
 0x4fe   :  { %v535_v62 = vmax.f32 %v532_v60, 0.0 }
 0x500   :  { %v536_v63 = vadd.f32 %v535_v62, %v349_v40 }
 0x502   :  { %v537_v0 = vmax.f32 %v536_v63, 0.0 }
 0x504   :  { %543 = vrot.lane.b32.xlu1 %v537_v0, %s865_s9  ;;  %550 = vrot.lane.b32.xlu0 %v537_v0, %s864_s3 }
 0x505   :  { %833 = vmatpush3.msra.mxu1 %v537_v0 }
 0x506   :  { %834 = vmatprep.subr.mxu1 %v859_v1 }
 0x508   :  { %557 = vperm.xlu0 %857, %v539_v2  }
 0x576   :  { %v544_v3 = vpop.permute.xlu1 %543  ;;  %v551_v4 = vpop.permute.xlu0 %550 }
 0x577   :  { %v553_v5 = vsel %vm358_vm8, 0.0, %v551_v4  ;;  %v547_v7 = vsel %vm546_vm10, 0.0, %v544_v3 }
 0x578   :  { %835 = vmatpush3.msk.msra.mxu1 %vm360_vm9, %v553_v5 }
 0x579   :  { %836 = vmatprep.subr.mxu1 %v859_v1 }
 0x57a   :  { %837 = vmatpush3.msk.msra.mxu1 %vm548_vm11, %v547_v7 }
 0x57b   :  { %839 = vmatmul.mubr.msk.f32.vlgmr.msra.gmra.mxu1 %vm192_vm6, %v538_v6 }
 0x583   :  { %v558_v9 = vpop.permute.xlu0 %557 }
 0x63b   :  { %v629_v10 = vpop.f32.mrf.mxu1 }
 0x63c   :  { %v630_v11 = vadd.f32 %v629_v10, %v558_v9 }
 0x63d   :  { %v840_v12 = vpop.f32.mrf.mxu1 }
 0x63e   :  { %v633_v13 = vmax.f32 %v630_v11, 0.0 }
 0x640   :  { %635 = vrot.lane.b32.xlu0 %v633_v13, %s865_s9  ;;  %640 = vrot.lane.b32.xlu1 %v633_v13, %s864_s3 }
 0x641   :  { %842 = vmatpush3.msra.mxu0 %v633_v13 }
 0x642   :  { %843 = vmatprep.subr.mxu0 %v859_v1 }
 0x644   :  { %647 = vperm.xlu1 %858, %v541_v14  }
 0x6b2   :  { %v636_v15 = vpop.permute.xlu0 %635  ;;  %v641_v16 = vpop.permute.xlu1 %640 }
 0x6b3   :  { %v643_v17 = vsel %vm358_vm8, 0.0, %v641_v16  ;;  %v638_v19 = vsel %vm546_vm10, 0.0, %v636_v15 }
 0x6b4   :  { %844 = vmatpush3.msk.msra.mxu0 %vm360_vm9, %v643_v17 }
 0x6b5   :  { %845 = vmatprep.subr.mxu0 %v859_v1 }
 0x6b6   :  { %846 = vmatpush3.msk.msra.mxu0 %vm548_vm11, %v638_v19 }
 0x6b7   :  { %848 = vmatmul.mubr.msk.f32.vlgmr.msra.gmra.mxu0 %vm192_vm6, %v540_v18 }
 0x6bf   :  { %v648_v20 = vpop.permute.xlu1 %647 }
 0x777   :  { %v719_v21 = vpop.f32.mrf.mxu0 }
 0x778   :  { %v720_v22 = vadd.f32 %v719_v21, %v648_v20 }
 0x779   :  { %v849_v23 = vpop.f32.mrf.mxu0 }
 0x77a   :  { %v723_v24 = vmax.f32 %v720_v22, 0.0 }
 0x77c   :  { %v724_v25 = vadd.f32 %v723_v24, %v537_v0 }
 0x77e   :  { %v725_v26 = vmax.f32 %v724_v25, 0.0 }
 0x780   :  { %727 = vst.msk [vmem:[%s1126_s15] sm:$0xff] %vm726_vm12, %v725_v26 }

</bundles_post_ra>
